<compile_context>
chip_gen: v7x
topology: tpu7x:2x2x1
jax: 0.10.0
libtpu: 0.0.40
codegen_flags: <defaults>
</compile_context>

<pallas_src>
import numpy as np
import jax
import jax.numpy as jnp
from jax import lax
from jax.experimental import pallas as pl
from jax.experimental.pallas import tpu as pltpu

_EPS = 1e-8
_K1 = 0.01
_K2 = 0.03
_DATA_RANGE = 255.0
_KSIZE = 11
_SIGMA = 1.5

ALPHA1 = 500.0   # ssim weight
ALPHA2 = 1.0     # gdl weight
ALPHA3 = 1.0     # f1 weight
MSE_WEIGHT = 1.0

_N_STATS = 8     # ss_sum, gdx, gdy, mx, my, mask, absdiff, sq
_LANES = 128


def _round_up(x, m):
    return ((x + m - 1) // m) * m


def _gaussian_1d(kernel_size=_KSIZE, sigma=_SIGMA):
    # matches piq.functional.gaussian_filter (2-D kernel = outer product of this)
    coords = np.arange(kernel_size, dtype=np.float32) - (kernel_size - 1) / 2.0
    g = np.exp(-(coords ** 2) / (2.0 * sigma ** 2))
    return (g / g.sum()).astype(np.float32)


def _band_matrix(out_len, in_len, taps, out_pad):
    """A[o, o:o+K] = taps for o < out_len; rows >= out_len stay zero (tile padding).
    (A @ img) is a valid (no-pad) 1-D correlation along rows."""
    A = np.zeros((out_pad, in_len), dtype=np.float32)
    k = taps.shape[0]
    for o in range(out_len):
        A[o, o:o + k] = taps
    return A


def _sip2net_kernel(scal_ref, pred_ref, target_ref, mask_ref, awt_ref, ah_ref,
                    out_ref):
    """One grid step = one image.  Emits 8 per-image partial sums (lane-broadcast)."""
    p = pred_ref[0]          # (H, W) f32
    t = target_ref[0]
    m = mask_ref[0]
    AwT = awt_ref[...]       # (W, Wo_pad)   zero cols beyond true Wo
    Ah = ah_ref[...]         # (Ho_pad, H)   zero rows beyond true Ho

    H, W = p.shape
    Ho = H - (_KSIZE - 1)
    Wo = W - (_KSIZE - 1)
    c1 = _K1 ** 2
    c2 = _K2 ** 2

    # Hoisted global scalars (SMEM): p_min, t_min, 1/((max-min+eps)*255) for each.
    p_min = scal_ref[0]
    t_min = scal_ref[1]
    inv_p = scal_ref[2]
    inv_t = scal_ref[3]

    # ---------- SSIM: normalized / masked / /255 planes; separable gaussian conv ----------
    x = (p - p_min) * m * inv_p
    y = (t - t_min) * m * inv_t

    def gconv(z):
        # column (W) conv then row (H) conv -- two small MXU dots, no kron / no stacking.
        t1 = jnp.dot(z, AwT, preferred_element_type=jnp.float32)     # (H, Wo_pad)
        return jnp.dot(Ah, t1, preferred_element_type=jnp.float32)   # (Ho_pad, Wo_pad)

    mu_x = gconv(x)
    mu_y = gconv(y)
    s_xx = gconv(x * x) - mu_x * mu_x
    s_yy = gconv(y * y) - mu_y * mu_y
    s_xy = gconv(x * y) - mu_x * mu_y

    num = (2.0 * mu_x * mu_y + c1) * (2.0 * s_xy + c2)
    den = (mu_x * mu_x + mu_y * mu_y + c1) * (s_xx + s_yy + c2)
    ss = num / den    # exact divide; see header note on approx-rcp numerics

    # Padded conv pixels evaluate to ss == 1 exactly; mask them out of the sum.
    rows = lax.broadcasted_iota(jnp.int32, ss.shape, 0)
    cols = lax.broadcasted_iota(jnp.int32, ss.shape, 1)
    valid = jnp.logical_and(rows < Ho, cols < Wo)
    ss_sum = jnp.sum(jnp.where(valid, ss, 0.0))

    # ---------- Gradient Difference Loss partials (per image; never crosses images) ----------
    pdx = jnp.abs(p[1:, :] - p[:-1, :])
    tdx = jnp.abs(t[1:, :] - t[:-1, :])
    wx = m[1:, :]
    pdy = jnp.abs(p[:, 1:] - p[:, :-1])
    tdy = jnp.abs(t[:, 1:] - t[:, :-1])
    wy = m[:, 1:]
    gdx_sum = jnp.sum(jnp.abs(pdx - tdx) * wx)
    gdy_sum = jnp.sum(jnp.abs(pdy - tdy) * wy)
    mx_sum = jnp.sum(wx)
    my_sum = jnp.sum(wy)

    # ---------- F1 + masked MSE partials (no per-pixel divides) ----------
    d = p - t
    mask_sum = jnp.sum(m)
    absdiff_sum = jnp.sum(jnp.abs(d) * m)
    sq_sum = jnp.sum(d * d * m)

    stats = (ss_sum, gdx_sum, gdy_sum, mx_sum, my_sum,
             mask_sum, absdiff_sum, sq_sum)
    for k, s in enumerate(stats):
        out_ref[0, k, :] = jnp.full((_LANES,), s, dtype=jnp.float32)


def sip2net_loss(pred, target, mask):
    """pred/target/mask: (B, H, W).  Returns (total_loss, components_vec) as device
    arrays (jit-friendly).  components_vec = [ssim, gdl, f1, sip2net, mse, total]."""
    B, H, W = pred.shape
    assert H >= _KSIZE and W >= _KSIZE, "H, W must be >= 11 for the SSIM window"
    Ho, Wo = H - (_KSIZE - 1), W - (_KSIZE - 1)
    Ho_pad = _round_up(Ho, 8)
    Wo_pad = _round_up(Wo, _LANES)

    g = _gaussian_1d()
    Ah = _band_matrix(Ho, H, g, Ho_pad)                                # (Ho_pad, H)
    AwT = np.ascontiguousarray(_band_matrix(Wo, W, g, Wo_pad).T)       # (W, Wo_pad)

    p = pred.astype(jnp.float32)
    t = target.astype(jnp.float32)
    m = mask.astype(jnp.float32)

    # Global min/max hoisted out of the kernel (on the raw, unmasked tensors, as
    # the reference module does); scalar reciprocals folded here.
    p_min, p_max = jnp.min(p), jnp.max(p)
    t_min, t_max = jnp.min(t), jnp.max(t)
    inv_p = 1.0 / ((p_max - p_min + _EPS) * _DATA_RANGE)
    inv_t = 1.0 / ((t_max - t_min + _EPS) * _DATA_RANGE)
    scalars = jnp.stack([p_min, t_min, inv_p, inv_t]).astype(jnp.float32)

    partials = pl.pallas_call(
        _sip2net_kernel,
        out_shape=jax.ShapeDtypeStruct((B, _N_STATS, _LANES), jnp.float32),
        grid=(B,),
        in_specs=[
            pl.BlockSpec(memory_space=pltpu.MemorySpace.SMEM),        # 4 scalars
            pl.BlockSpec((1, H, W), lambda b: (b, 0, 0)),             # pred
            pl.BlockSpec((1, H, W), lambda b: (b, 0, 0)),             # target
            pl.BlockSpec((1, H, W), lambda b: (b, 0, 0)),             # mask
            pl.BlockSpec((W, Wo_pad), lambda b: (0, 0)),              # AwT (constant)
            pl.BlockSpec((Ho_pad, H), lambda b: (0, 0)),              # Ah  (constant)
        ],
        out_specs=pl.BlockSpec((1, _N_STATS, _LANES), lambda b: (b, 0, 0)),
        compiler_params=pltpu.CompilerParams(
            dimension_semantics=("parallel",),
            vmem_limit_bytes=48 * 1024 * 1024,
        ),
    )(scalars, p, t, m, jnp.asarray(AwT), jnp.asarray(Ah))

    s = jnp.sum(partials[:, :, 0], axis=0)                            # (8,) partial sums
    ss_sum, gdx, gdy, mx, my, msum, absd, sq = (s[i] for i in range(_N_STATS))

    ssim_loss = 1.0 - ss_sum / float(B * Ho * Wo)
    gdl_loss = gdx / (mx + _EPS) + gdy / (my + _EPS)
    max_val = jnp.maximum(p_max, t_max) + _EPS
    f1_loss = 1.0 - (msum - absd / max_val) / (msum + _EPS)
    mse = sq / (msum + _EPS)
    sip2net = ALPHA1 * ssim_loss + ALPHA2 * gdl_loss + ALPHA3 * f1_loss
    total = sip2net + MSE_WEIGHT * mse
    comps = jnp.stack([ssim_loss, gdl_loss, f1_loss, sip2net, mse, total])
    return total, comps


def components_dict(components_vec):
    """Optional convenience mirroring the PyTorch module's dict.
    NOTE: forces a device->host sync; keep it off the hot path."""
    v = np.asarray(components_vec)
    return {
        'ssim_loss': float(v[0]), 'gdl_loss': float(v[1]), 'f1_loss': float(v[2]),
        'sip2net_loss': float(v[3]), 'mse': float(v[4]), 'total_loss': float(v[5]),
    }


def _reference(pred, target, mask):
    """Pure-JAX mirror of the PyTorch forward (same math as the kernel)."""
    eps = _EPS
    p = pred[:, None]; t = target[:, None]; m = mask[:, None]   # (B,1,H,W)
    p_min, p_max = jnp.min(p), jnp.max(p)
    t_min, t_max = jnp.min(t), jnp.max(t)
    pn = (p - p_min) / (p_max - p_min + eps) * m
    tn = (t - t_min) / (t_max - t_min + eps) * m

    x = pn / _DATA_RANGE
    y = tn / _DATA_RANGE
    g = _gaussian_1d()
    H, W = p.shape[-2:]
    Ho, Wo = H - _KSIZE + 1, W - _KSIZE + 1
    Ah = jnp.asarray(_band_matrix(Ho, H, g, Ho))
    Aw = jnp.asarray(_band_matrix(Wo, W, g, Wo))

    def gconv(z):
        return jnp.einsum('oh,bchw,pw->bcop', Ah, z, Aw)

    mu_x = gconv(x); mu_y = gconv(y)
    sxx = gconv(x * x) - mu_x ** 2
    syy = gconv(y * y) - mu_y ** 2
    sxy = gconv(x * y) - mu_x * mu_y
    c1, c2 = _K1 ** 2, _K2 ** 2
    cs = (2.0 * sxy + c2) / (sxx + syy + c2)
    ssm = (2.0 * mu_x * mu_y + c1) / (mu_x ** 2 + mu_y ** 2 + c1) * cs
    ssim_loss = 1.0 - jnp.mean(jnp.mean(ssm, axis=(-1, -2)))

    pdx = jnp.abs(p[:, :, 1:, :] - p[:, :, :-1, :])
    pdy = jnp.abs(p[:, :, :, 1:] - p[:, :, :, :-1])
    tdx = jnp.abs(t[:, :, 1:, :] - t[:, :, :-1, :])
    tdy = jnp.abs(t[:, :, :, 1:] - t[:, :, :, :-1])
    mx = m[:, :, 1:, :]; my = m[:, :, :, 1:]
    gdl = (jnp.sum(jnp.abs(pdx - tdx) * mx) / (jnp.sum(mx) + eps)
           + jnp.sum(jnp.abs(pdy - tdy) * my) / (jnp.sum(my) + eps))

    max_val = jnp.maximum(jnp.max(p), jnp.max(t)) + eps
    sim = (1.0 - jnp.abs(p - t) / max_val) * m
    f1 = 1.0 - jnp.sum(sim) / (jnp.sum(m) + eps)

    mse = jnp.sum((p - t) ** 2 * m) / (jnp.sum(m) + eps)
    sip2net = ALPHA1 * ssim_loss + ALPHA2 * gdl + ALPHA3 * f1
    total = sip2net + MSE_WEIGHT * mse
    return jnp.stack([ssim_loss, gdl, f1, sip2net, mse, total])


if __name__ == "__main__":
    key = jax.random.PRNGKey(0)
    k1, k2, k3 = jax.random.split(key, 3)
    B, H, W = 2, 16, 16   # H, W >= 11 required by the 11x11 SSIM window
    pred = jax.random.uniform(k1, (B, H, W), jnp.float32, 0.0, 255.0)
    target = jax.random.uniform(k2, (B, H, W), jnp.float32, 0.0, 255.0)
    mask = (jax.random.uniform(k3, (B, H, W)) > 0.3).astype(jnp.float32)

    loss_fn = jax.jit(sip2net_loss)            # no host round-trip in the hot path
    total, comps = loss_fn(pred, target, mask)
    total, comps = jax.block_until_ready((total, comps))

    ref = np.asarray(_reference(pred, target, mask))
    np.testing.assert_allclose(np.asarray(comps), ref, rtol=2e-3, atol=1e-4)

    print("KERNEL_OK")
</pallas_src>

<mosaic_0001>
module attributes {stable_mosaic.version = 11 : i64} {
  func.func @_sip2net_kernel(%arg0: i32, %arg1: memref<4xf32, #tpu.memory_space<smem>>, %arg2: memref<1x16x16xf32, #tpu.memory_space<vmem>>, %arg3: memref<1x16x16xf32, #tpu.memory_space<vmem>>, %arg4: memref<1x16x16xf32, #tpu.memory_space<vmem>>, %arg5: memref<16x128xf32, #tpu.memory_space<vmem>>, %arg6: memref<8x16xf32, #tpu.memory_space<vmem>>, %arg7: memref<1x8x128xf32, #tpu.memory_space<vmem>>) attributes {dimension_semantics = [#tpu.dimension_semantics<parallel>], iteration_bounds = array<i64: 2>, scalar_prefetch = 0 : i64, scratch_operands = 0 : i64, tpu.core_type = #tpu.core_type<tc>, window_params = [{transform_indices = @transform_0, window_bounds = array<i64: 4>}, {transform_indices = @transform_1, window_bounds = array<i64: 1, 16, 16>}, {transform_indices = @transform_2, window_bounds = array<i64: 1, 16, 16>}, {transform_indices = @transform_3, window_bounds = array<i64: 1, 16, 16>}, {pipeline_mode = #tpu.pipeline_mode<synchronous>, transform_indices = @transform_4, window_bounds = array<i64: 16, 128>}, {pipeline_mode = #tpu.pipeline_mode<synchronous>, transform_indices = @transform_5, window_bounds = array<i64: 8, 16>}, {transform_indices = @transform_6, window_bounds = array<i64: 1, 8, 128>}]} {
    %c0 = arith.constant 0 : index
    %c0_0 = arith.constant 0 : index
    %c0_1 = arith.constant 0 : index
    %0 = vector.load %arg2[%c0, %c0_0, %c0_1] : memref<1x16x16xf32, #tpu.memory_space<vmem>>, vector<1x16x16xf32>
    %1 = vector.shape_cast %0 : vector<1x16x16xf32> to vector<16x16xf32>
    %c0_2 = arith.constant 0 : index
    %c0_3 = arith.constant 0 : index
    %c0_4 = arith.constant 0 : index
    %2 = vector.load %arg3[%c0_2, %c0_3, %c0_4] : memref<1x16x16xf32, #tpu.memory_space<vmem>>, vector<1x16x16xf32>
    %3 = vector.shape_cast %2 : vector<1x16x16xf32> to vector<16x16xf32>
    %c0_5 = arith.constant 0 : index
    %c0_6 = arith.constant 0 : index
    %c0_7 = arith.constant 0 : index
    %4 = vector.load %arg4[%c0_5, %c0_6, %c0_7] : memref<1x16x16xf32, #tpu.memory_space<vmem>>, vector<1x16x16xf32>
    %5 = vector.shape_cast %4 : vector<1x16x16xf32> to vector<16x16xf32>
    %c0_8 = arith.constant 0 : index
    %c0_9 = arith.constant 0 : index
    %6 = vector.load %arg5[%c0_8, %c0_9] : memref<16x128xf32, #tpu.memory_space<vmem>>, vector<16x128xf32>
    %c0_10 = arith.constant 0 : index
    %c0_11 = arith.constant 0 : index
    %7 = vector.load %arg6[%c0_10, %c0_11] : memref<8x16xf32, #tpu.memory_space<vmem>>, vector<8x16xf32>
    %c0_12 = arith.constant 0 : index
    %8 = memref.load %arg1[%c0_12] : memref<4xf32, #tpu.memory_space<smem>>
    %c1 = arith.constant 1 : index
    %9 = memref.load %arg1[%c1] : memref<4xf32, #tpu.memory_space<smem>>
    %c2 = arith.constant 2 : index
    %10 = memref.load %arg1[%c2] : memref<4xf32, #tpu.memory_space<smem>>
    %c3 = arith.constant 3 : index
    %11 = memref.load %arg1[%c3] : memref<4xf32, #tpu.memory_space<smem>>
    %12 = vector.broadcast %8 : f32 to vector<16x16xf32>
    %13 = arith.subf %1, %12 : vector<16x16xf32>
    %14 = arith.mulf %13, %5 : vector<16x16xf32>
    %15 = vector.broadcast %10 : f32 to vector<16x16xf32>
    %16 = arith.mulf %14, %15 : vector<16x16xf32>
    %17 = vector.broadcast %9 : f32 to vector<16x16xf32>
    %18 = arith.subf %3, %17 : vector<16x16xf32>
    %19 = arith.mulf %18, %5 : vector<16x16xf32>
    %20 = vector.broadcast %11 : f32 to vector<16x16xf32>
    %21 = arith.mulf %19, %20 : vector<16x16xf32>
    %cst = arith.constant dense<0.000000e+00> : vector<16x128xf32>
    %22 = tpu.matmul %16, %6, %cst {dimension_numbers = #tpu.dot_dimension_numbers<[1], [0], [0], [1], [0, 0, 1, 1], [], []>} : vector<16x16xf32>, vector<16x128xf32>, vector<16x128xf32> -> vector<16x128xf32>
    %cst_13 = arith.constant dense<0.000000e+00> : vector<8x128xf32>
    %23 = tpu.matmul %7, %22, %cst_13 {dimension_numbers = #tpu.dot_dimension_numbers<[1], [0], [0], [1], [0, 0, 1, 1], [], []>} : vector<8x16xf32>, vector<16x128xf32>, vector<8x128xf32> -> vector<8x128xf32>
    %cst_14 = arith.constant dense<0.000000e+00> : vector<16x128xf32>
    %24 = tpu.matmul %21, %6, %cst_14 {dimension_numbers = #tpu.dot_dimension_numbers<[1], [0], [0], [1], [0, 0, 1, 1], [], []>} : vector<16x16xf32>, vector<16x128xf32>, vector<16x128xf32> -> vector<16x128xf32>
    %cst_15 = arith.constant dense<0.000000e+00> : vector<8x128xf32>
    %25 = tpu.matmul %7, %24, %cst_15 {dimension_numbers = #tpu.dot_dimension_numbers<[1], [0], [0], [1], [0, 0, 1, 1], [], []>} : vector<8x16xf32>, vector<16x128xf32>, vector<8x128xf32> -> vector<8x128xf32>
    %26 = arith.mulf %16, %16 : vector<16x16xf32>
    %cst_16 = arith.constant dense<0.000000e+00> : vector<16x128xf32>
    %27 = tpu.matmul %26, %6, %cst_16 {dimension_numbers = #tpu.dot_dimension_numbers<[1], [0], [0], [1], [0, 0, 1, 1], [], []>} : vector<16x16xf32>, vector<16x128xf32>, vector<16x128xf32> -> vector<16x128xf32>
    %cst_17 = arith.constant dense<0.000000e+00> : vector<8x128xf32>
    %28 = tpu.matmul %7, %27, %cst_17 {dimension_numbers = #tpu.dot_dimension_numbers<[1], [0], [0], [1], [0, 0, 1, 1], [], []>} : vector<8x16xf32>, vector<16x128xf32>, vector<8x128xf32> -> vector<8x128xf32>
    %29 = arith.mulf %23, %23 : vector<8x128xf32>
    %30 = arith.subf %28, %29 : vector<8x128xf32>
    %31 = arith.mulf %21, %21 : vector<16x16xf32>
    %cst_18 = arith.constant dense<0.000000e+00> : vector<16x128xf32>
    %32 = tpu.matmul %31, %6, %cst_18 {dimension_numbers = #tpu.dot_dimension_numbers<[1], [0], [0], [1], [0, 0, 1, 1], [], []>} : vector<16x16xf32>, vector<16x128xf32>, vector<16x128xf32> -> vector<16x128xf32>
    %cst_19 = arith.constant dense<0.000000e+00> : vector<8x128xf32>
    %33 = tpu.matmul %7, %32, %cst_19 {dimension_numbers = #tpu.dot_dimension_numbers<[1], [0], [0], [1], [0, 0, 1, 1], [], []>} : vector<8x16xf32>, vector<16x128xf32>, vector<8x128xf32> -> vector<8x128xf32>
    %34 = arith.mulf %25, %25 : vector<8x128xf32>
    %35 = arith.subf %33, %34 : vector<8x128xf32>
    %36 = arith.mulf %16, %21 : vector<16x16xf32>
    %cst_20 = arith.constant dense<0.000000e+00> : vector<16x128xf32>
    %37 = tpu.matmul %36, %6, %cst_20 {dimension_numbers = #tpu.dot_dimension_numbers<[1], [0], [0], [1], [0, 0, 1, 1], [], []>} : vector<16x16xf32>, vector<16x128xf32>, vector<16x128xf32> -> vector<16x128xf32>
    %cst_21 = arith.constant dense<0.000000e+00> : vector<8x128xf32>
    %38 = tpu.matmul %7, %37, %cst_21 {dimension_numbers = #tpu.dot_dimension_numbers<[1], [0], [0], [1], [0, 0, 1, 1], [], []>} : vector<8x16xf32>, vector<16x128xf32>, vector<8x128xf32> -> vector<8x128xf32>
    %39 = arith.mulf %23, %25 : vector<8x128xf32>
    %40 = arith.subf %38, %39 : vector<8x128xf32>
    %cst_22 = arith.constant 2.000000e+00 : f32
    %41 = vector.broadcast %cst_22 : f32 to vector<8x128xf32>
    %42 = arith.mulf %41, %23 : vector<8x128xf32>
    %43 = arith.mulf %42, %25 : vector<8x128xf32>
    %cst_23 = arith.constant 9.99999974E-5 : f32
    %44 = vector.broadcast %cst_23 : f32 to vector<8x128xf32>
    %45 = arith.addf %43, %44 : vector<8x128xf32>
    %cst_24 = arith.constant 2.000000e+00 : f32
    %46 = vector.broadcast %cst_24 : f32 to vector<8x128xf32>
    %47 = arith.mulf %46, %40 : vector<8x128xf32>
    %cst_25 = arith.constant 8.99999984E-4 : f32
    %48 = vector.broadcast %cst_25 : f32 to vector<8x128xf32>
    %49 = arith.addf %47, %48 : vector<8x128xf32>
    %50 = arith.mulf %45, %49 : vector<8x128xf32>
    %51 = arith.mulf %23, %23 : vector<8x128xf32>
    %52 = arith.mulf %25, %25 : vector<8x128xf32>
    %53 = arith.addf %51, %52 : vector<8x128xf32>
    %cst_26 = arith.constant 9.99999974E-5 : f32
    %54 = vector.broadcast %cst_26 : f32 to vector<8x128xf32>
    %55 = arith.addf %53, %54 : vector<8x128xf32>
    %56 = arith.addf %30, %35 : vector<8x128xf32>
    %cst_27 = arith.constant 8.99999984E-4 : f32
    %57 = vector.broadcast %cst_27 : f32 to vector<8x128xf32>
    %58 = arith.addf %56, %57 : vector<8x128xf32>
    %59 = arith.mulf %55, %58 : vector<8x128xf32>
    %60 = arith.divf %50, %59 : vector<8x128xf32>
    %61 = tpu.iota {dimensions = array<i32: 0>} : vector<8x128xi32>
    %62 = tpu.iota {dimensions = array<i32: 1>} : vector<8x128xi32>
    %c6_i32 = arith.constant 6 : i32
    %63 = vector.broadcast %c6_i32 : i32 to vector<8x128xi32>
    %64 = arith.cmpi slt, %61, %63 : vector<8x128xi32>
    %c6_i32_28 = arith.constant 6 : i32
    %65 = vector.broadcast %c6_i32_28 : i32 to vector<8x128xi32>
    %66 = arith.cmpi slt, %62, %65 : vector<8x128xi32>
    %67 = arith.andi %64, %66 : vector<8x128xi1>
    %cst_29 = arith.constant 0.000000e+00 : f32
    %68 = vector.broadcast %cst_29 : f32 to vector<8x128xf32>
    %69 = arith.select %67, %60, %68 : vector<8x128xi1>, vector<8x128xf32>
    %70 = vector.shape_cast %69 : vector<8x128xf32> to vector<1x8x128xf32>
    %cst_30 = arith.constant dense<0.000000e+00> : vector<1xf32>
    %71 = vector.multi_reduction <add>, %70, %cst_30 [1, 2] : vector<1x8x128xf32> to vector<1xf32>
    %72 = vector.shape_cast %71 : vector<1xf32> to vector<1x1x1xf32>
    %73 = vector.extract %72[0, 0, 0] : f32 from vector<1x1x1xf32>
    %74 = vector.extract_strided_slice %1 {offsets = [1, 0], sizes = [15, 16], strides = [1, 1]} : vector<16x16xf32> to vector<15x16xf32>
    %75 = vector.extract_strided_slice %1 {offsets = [0, 0], sizes = [15, 16], strides = [1, 1]} : vector<16x16xf32> to vector<15x16xf32>
    %76 = arith.subf %74, %75 : vector<15x16xf32>
    %77 = math.absf %76 : vector<15x16xf32>
    %78 = vector.extract_strided_slice %3 {offsets = [1, 0], sizes = [15, 16], strides = [1, 1]} : vector<16x16xf32> to vector<15x16xf32>
    %79 = vector.extract_strided_slice %3 {offsets = [0, 0], sizes = [15, 16], strides = [1, 1]} : vector<16x16xf32> to vector<15x16xf32>
    %80 = arith.subf %78, %79 : vector<15x16xf32>
    %81 = math.absf %80 : vector<15x16xf32>
    %82 = vector.extract_strided_slice %5 {offsets = [1, 0], sizes = [15, 16], strides = [1, 1]} : vector<16x16xf32> to vector<15x16xf32>
    %83 = vector.extract_strided_slice %1 {offsets = [0, 1], sizes = [16, 15], strides = [1, 1]} : vector<16x16xf32> to vector<16x15xf32>
    %84 = vector.extract_strided_slice %1 {offsets = [0, 0], sizes = [16, 15], strides = [1, 1]} : vector<16x16xf32> to vector<16x15xf32>
    %85 = arith.subf %83, %84 : vector<16x15xf32>
    %86 = math.absf %85 : vector<16x15xf32>
    %87 = vector.extract_strided_slice %3 {offsets = [0, 1], sizes = [16, 15], strides = [1, 1]} : vector<16x16xf32> to vector<16x15xf32>
    %88 = vector.extract_strided_slice %3 {offsets = [0, 0], sizes = [16, 15], strides = [1, 1]} : vector<16x16xf32> to vector<16x15xf32>
    %89 = arith.subf %87, %88 : vector<16x15xf32>
    %90 = math.absf %89 : vector<16x15xf32>
    %91 = vector.extract_strided_slice %5 {offsets = [0, 1], sizes = [16, 15], strides = [1, 1]} : vector<16x16xf32> to vector<16x15xf32>
    %92 = arith.subf %77, %81 : vector<15x16xf32>
    %93 = math.absf %92 : vector<15x16xf32>
    %94 = arith.mulf %93, %82 : vector<15x16xf32>
    %95 = vector.shape_cast %94 : vector<15x16xf32> to vector<1x15x16xf32>
    %cst_31 = arith.constant dense<0.000000e+00> : vector<1xf32>
    %96 = vector.multi_reduction <add>, %95, %cst_31 [1, 2] : vector<1x15x16xf32> to vector<1xf32>
    %97 = vector.shape_cast %96 : vector<1xf32> to vector<1x1x1xf32>
    %98 = vector.extract %97[0, 0, 0] : f32 from vector<1x1x1xf32>
    %99 = arith.subf %86, %90 : vector<16x15xf32>
    %100 = math.absf %99 : vector<16x15xf32>
    %101 = arith.mulf %100, %91 : vector<16x15xf32>
    %102 = vector.shape_cast %101 : vector<16x15xf32> to vector<1x16x15xf32>
    %cst_32 = arith.constant dense<0.000000e+00> : vector<1xf32>
    %103 = vector.multi_reduction <add>, %102, %cst_32 [1, 2] : vector<1x16x15xf32> to vector<1xf32>
    %104 = vector.shape_cast %103 : vector<1xf32> to vector<1x1x1xf32>
    %105 = vector.extract %104[0, 0, 0] : f32 from vector<1x1x1xf32>
    %106 = vector.shape_cast %82 : vector<15x16xf32> to vector<1x15x16xf32>
    %cst_33 = arith.constant dense<0.000000e+00> : vector<1xf32>
    %107 = vector.multi_reduction <add>, %106, %cst_33 [1, 2] : vector<1x15x16xf32> to vector<1xf32>
    %108 = vector.shape_cast %107 : vector<1xf32> to vector<1x1x1xf32>
    %109 = vector.extract %108[0, 0, 0] : f32 from vector<1x1x1xf32>
    %110 = vector.shape_cast %91 : vector<16x15xf32> to vector<1x16x15xf32>
    %cst_34 = arith.constant dense<0.000000e+00> : vector<1xf32>
    %111 = vector.multi_reduction <add>, %110, %cst_34 [1, 2] : vector<1x16x15xf32> to vector<1xf32>
    %112 = vector.shape_cast %111 : vector<1xf32> to vector<1x1x1xf32>
    %113 = vector.extract %112[0, 0, 0] : f32 from vector<1x1x1xf32>
    %114 = arith.subf %1, %3 : vector<16x16xf32>
    %115 = vector.shape_cast %5 : vector<16x16xf32> to vector<1x16x16xf32>
    %cst_35 = arith.constant dense<0.000000e+00> : vector<1xf32>
    %116 = vector.multi_reduction <add>, %115, %cst_35 [1, 2] : vector<1x16x16xf32> to vector<1xf32>
    %117 = vector.shape_cast %116 : vector<1xf32> to vector<1x1x1xf32>
    %118 = vector.extract %117[0, 0, 0] : f32 from vector<1x1x1xf32>
    %119 = math.absf %114 : vector<16x16xf32>
    %120 = arith.mulf %119, %5 : vector<16x16xf32>
    %121 = vector.shape_cast %120 : vector<16x16xf32> to vector<1x16x16xf32>
    %cst_36 = arith.constant dense<0.000000e+00> : vector<1xf32>
    %122 = vector.multi_reduction <add>, %121, %cst_36 [1, 2] : vector<1x16x16xf32> to vector<1xf32>
    %123 = vector.shape_cast %122 : vector<1xf32> to vector<1x1x1xf32>
    %124 = vector.extract %123[0, 0, 0] : f32 from vector<1x1x1xf32>
    %125 = arith.mulf %114, %114 : vector<16x16xf32>
    %126 = arith.mulf %125, %5 : vector<16x16xf32>
    %127 = vector.shape_cast %126 : vector<16x16xf32> to vector<1x16x16xf32>
    %cst_37 = arith.constant dense<0.000000e+00> : vector<1xf32>
    %128 = vector.multi_reduction <add>, %127, %cst_37 [1, 2] : vector<1x16x16xf32> to vector<1xf32>
    %129 = vector.shape_cast %128 : vector<1xf32> to vector<1x1x1xf32>
    %130 = vector.extract %129[0, 0, 0] : f32 from vector<1x1x1xf32>
    %131 = vector.broadcast %73 : f32 to vector<128xf32>
    %c0_38 = arith.constant 0 : index
    %c0_39 = arith.constant 0 : index
    %c0_40 = arith.constant 0 : index
    %132 = vector.load %arg7[%c0_38, %c0_39, %c0_40] : memref<1x8x128xf32, #tpu.memory_space<vmem>>, vector<1x1x128xf32>
    %133 = vector.shape_cast %132 : vector<1x1x128xf32> to vector<128xf32>
    %134 = vector.shape_cast %131 : vector<128xf32> to vector<1x1x128xf32>
    tpu.vector_store %arg7[%c0_38, %c0_39, %c0_40], %134 {strides = array<i32>} : memref<1x8x128xf32, #tpu.memory_space<vmem>>, vector<1x1x128xf32>,
    %135 = vector.broadcast %98 : f32 to vector<128xf32>
    %c0_41 = arith.constant 0 : index
    %c1_42 = arith.constant 1 : index
    %c0_43 = arith.constant 0 : index
    %136 = vector.load %arg7[%c0_41, %c1_42, %c0_43] : memref<1x8x128xf32, #tpu.memory_space<vmem>>, vector<1x1x128xf32>
    %137 = vector.shape_cast %136 : vector<1x1x128xf32> to vector<128xf32>
    %138 = vector.shape_cast %135 : vector<128xf32> to vector<1x1x128xf32>
    tpu.vector_store %arg7[%c0_41, %c1_42, %c0_43], %138 {strides = array<i32>} : memref<1x8x128xf32, #tpu.memory_space<vmem>>, vector<1x1x128xf32>,
    %139 = vector.broadcast %105 : f32 to vector<128xf32>
    %c0_44 = arith.constant 0 : index
    %c2_45 = arith.constant 2 : index
    %c0_46 = arith.constant 0 : index
    %140 = vector.load %arg7[%c0_44, %c2_45, %c0_46] : memref<1x8x128xf32, #tpu.memory_space<vmem>>, vector<1x1x128xf32>
    %141 = vector.shape_cast %140 : vector<1x1x128xf32> to vector<128xf32>
    %142 = vector.shape_cast %139 : vector<128xf32> to vector<1x1x128xf32>
    tpu.vector_store %arg7[%c0_44, %c2_45, %c0_46], %142 {strides = array<i32>} : memref<1x8x128xf32, #tpu.memory_space<vmem>>, vector<1x1x128xf32>,
    %143 = vector.broadcast %109 : f32 to vector<128xf32>
    %c0_47 = arith.constant 0 : index
    %c3_48 = arith.constant 3 : index
    %c0_49 = arith.constant 0 : index
    %144 = vector.load %arg7[%c0_47, %c3_48, %c0_49] : memref<1x8x128xf32, #tpu.memory_space<vmem>>, vector<1x1x128xf32>
    %145 = vector.shape_cast %144 : vector<1x1x128xf32> to vector<128xf32>
    %146 = vector.shape_cast %143 : vector<128xf32> to vector<1x1x128xf32>
    tpu.vector_store %arg7[%c0_47, %c3_48, %c0_49], %146 {strides = array<i32>} : memref<1x8x128xf32, #tpu.memory_space<vmem>>, vector<1x1x128xf32>,
    %147 = vector.broadcast %113 : f32 to vector<128xf32>
    %c0_50 = arith.constant 0 : index
    %c4 = arith.constant 4 : index
    %c0_51 = arith.constant 0 : index
    %148 = vector.load %arg7[%c0_50, %c4, %c0_51] : memref<1x8x128xf32, #tpu.memory_space<vmem>>, vector<1x1x128xf32>
    %149 = vector.shape_cast %148 : vector<1x1x128xf32> to vector<128xf32>
    %150 = vector.shape_cast %147 : vector<128xf32> to vector<1x1x128xf32>
    tpu.vector_store %arg7[%c0_50, %c4, %c0_51], %150 {strides = array<i32>} : memref<1x8x128xf32, #tpu.memory_space<vmem>>, vector<1x1x128xf32>,
    %151 = vector.broadcast %118 : f32 to vector<128xf32>
    %c0_52 = arith.constant 0 : index
    %c5 = arith.constant 5 : index
    %c0_53 = arith.constant 0 : index
    %152 = vector.load %arg7[%c0_52, %c5, %c0_53] : memref<1x8x128xf32, #tpu.memory_space<vmem>>, vector<1x1x128xf32>
    %153 = vector.shape_cast %152 : vector<1x1x128xf32> to vector<128xf32>
    %154 = vector.shape_cast %151 : vector<128xf32> to vector<1x1x128xf32>
    tpu.vector_store %arg7[%c0_52, %c5, %c0_53], %154 {strides = array<i32>} : memref<1x8x128xf32, #tpu.memory_space<vmem>>, vector<1x1x128xf32>,
    %155 = vector.broadcast %124 : f32 to vector<128xf32>
    %c0_54 = arith.constant 0 : index
    %c6 = arith.constant 6 : index
    %c0_55 = arith.constant 0 : index
    %156 = vector.load %arg7[%c0_54, %c6, %c0_55] : memref<1x8x128xf32, #tpu.memory_space<vmem>>, vector<1x1x128xf32>
    %157 = vector.shape_cast %156 : vector<1x1x128xf32> to vector<128xf32>
    %158 = vector.shape_cast %155 : vector<128xf32> to vector<1x1x128xf32>
    tpu.vector_store %arg7[%c0_54, %c6, %c0_55], %158 {strides = array<i32>} : memref<1x8x128xf32, #tpu.memory_space<vmem>>, vector<1x1x128xf32>,
    %159 = vector.broadcast %130 : f32 to vector<128xf32>
    %c0_56 = arith.constant 0 : index
    %c7 = arith.constant 7 : index
    %c0_57 = arith.constant 0 : index
    %160 = vector.load %arg7[%c0_56, %c7, %c0_57] : memref<1x8x128xf32, #tpu.memory_space<vmem>>, vector<1x1x128xf32>
    %161 = vector.shape_cast %160 : vector<1x1x128xf32> to vector<128xf32>
    %162 = vector.shape_cast %159 : vector<128xf32> to vector<1x1x128xf32>
    tpu.vector_store %arg7[%c0_56, %c7, %c0_57], %162 {strides = array<i32>} : memref<1x8x128xf32, #tpu.memory_space<vmem>>, vector<1x1x128xf32>,
    return
  }
  func.func @transform_0(%arg0: i32) -> i32 {
    %c0_i32 = arith.constant 0 : i32
    %c0_i32_0 = arith.constant 0 : i32
    return %c0_i32 : i32
  }
  func.func @transform_1(%arg0: i32) -> (i32, i32, i32) {
    %c0_i32 = arith.constant 0 : i32
    %c0_i32_0 = arith.constant 0 : i32
    %c0_i32_1 = arith.constant 0 : i32
    return %arg0, %c0_i32, %c0_i32_0 : i32, i32, i32
  }
  func.func @transform_2(%arg0: i32) -> (i32, i32, i32) {
    %c0_i32 = arith.constant 0 : i32
    %c0_i32_0 = arith.constant 0 : i32
    %c0_i32_1 = arith.constant 0 : i32
    return %arg0, %c0_i32, %c0_i32_0 : i32, i32, i32
  }
  func.func @transform_3(%arg0: i32) -> (i32, i32, i32) {
    %c0_i32 = arith.constant 0 : i32
    %c0_i32_0 = arith.constant 0 : i32
    %c0_i32_1 = arith.constant 0 : i32
    return %arg0, %c0_i32, %c0_i32_0 : i32, i32, i32
  }
  func.func @transform_4(%arg0: i32) -> (i32, i32) {
    %c0_i32 = arith.constant 0 : i32
    %c0_i32_0 = arith.constant 0 : i32
    %c0_i32_1 = arith.constant 0 : i32
    return %c0_i32, %c0_i32_0 : i32, i32
  }
  func.func @transform_5(%arg0: i32) -> (i32, i32) {
    %c0_i32 = arith.constant 0 : i32
    %c0_i32_0 = arith.constant 0 : i32
    %c0_i32_1 = arith.constant 0 : i32
    return %c0_i32, %c0_i32_0 : i32, i32
  }
  func.func @transform_6(%arg0: i32) -> (i32, i32, i32) {
    %c0_i32 = arith.constant 0 : i32
    %c0_i32_0 = arith.constant 0 : i32
    %c0_i32_1 = arith.constant 0 : i32
    return %arg0, %c0_i32, %c0_i32_0 : i32, i32, i32
  }
}

</mosaic_0001>

<bundles_post_ra>
// kernel: sip2net_loss.1
= control target key start
LH: loop header
LB: loop body
LE: loop exit
PB: predicated region body
PF: predicated region fallthrough
CT: control target
= control target key end

     0   :  { %11 = vsyncpa [#allocation3], 0  ;;  %s1706_s21 = smov 0   ;;  %s1860_s0 = inlined_call_operand.vmem [shape: f32[4], index: 0, kind: input, shape index: {}]   ;;  %s1861_s1 = inlined_call_operand.vmem [shape: f32[2,16,16], index: 1, kind: input, shape index: {}]   ;;  %s1862_s2 = inlined_call_operand.vmem [shape: f32[2,16,16], index: 2, kind: input, shape index: {}]   ;;  %s1863_s3 = inlined_call_operand.vmem [shape: f32[2,16,16], index: 3, kind: input, shape index: {}]   ;;  %s1864_s4 = inlined_call_operand.vmem [shape: f32[16,128], index: 4, kind: input, shape index: {}]   ;;  %s1865_s5 = inlined_call_operand.vmem [shape: f32[8,16], index: 5, kind: input, shape index: {}]   ;;  %s1866_s6 = inlined_call_operand.vmem [shape: f32[2,8,128], index: 6, kind: output, shape index: {}]  }
   0x1 LB: > { %s1712_s22 = sadd.s32 4294967295, %s1663_s21   ;;  %p1421_p0 = scmp.ge.s32.totalorder %s1663_s21, 1  ;;  %s1663_s21 = sphi %s1706_s21, %s17_s21  }
   0x2   : > { %p189_p1 = scmp.lt.s32.totalorder %s1663_s21, 3  ;;  %s202_s25 = sshll.u32 %s1860_s0, 4  ;;  %s203_s25 = int_to_ptr.vmem [resolvable:$true] %s202_s25 }
   0x3   : > { %p1620_p3 = scmp.eq.s32.totalorder %s1712_s22, 0  ;;  %s1638_s27 = scalar_lea.vmem %s203_s25, 16 }
   0x4   : > { %p1719_p2 = pnand %p1421_p0, %p189_p1  ;;  %p1639_p6 = scmp.ne.s32.totalorder %s203_s25, %s1638_s27 }
   0x5   : > { %p1646_p10 = scmp.lt.s32.totalorder %s203_s25, %s203_s25  ;;  %p1647_p11 = scmp.lt.s32.totalorder %s1638_s27, %s1638_s27 }
   0x6   : > { %p1616_p4 = pneg %p1719_p2 }
   0x7   : > { %p1648_p12 = por %p1647_p11, %p1646_p10 }
   0x8   : > { %p1617_p5 = pnand %p1620_p3, %p1616_p4 }
   0xa   : > { %p1640_p7 = pneg %p1617_p5 }
   0xc   : > { %p1641_p8 = pnand %p1640_p7, %p1639_p6 }
   0xe   : > { %p1642_p9 = pneg %p1641_p8 }
  0x10   : > { %p1649_p13 = pnand %p1648_p12, %p1642_p9 }
  0x12   : > { %1652 = shalt.err (!%p1649_p13)
}
  0x13   : > { %s1665_s28 = smov [#allocation2]   ;;  %245 = sbr.rel (%p1719_p2) target bundleno = 720 (0x2d0), region = 44 }
  0x14   : > { %1619 = dma.vmem_to_smem (!%p1617_p5), %s203_s25, 16, %s1665_s28, [#allocation3]  }
  0x1a   : > { %1658 = dma.done.wait (%p1620_p3), [#allocation3], 16  }
  0x1b   : > { %1660 = vsyncadd (%p1620_p3), [#allocation3], 4294967280 }
  0x1c   : > { %251 = sfence }
  0x1d   : > { %v310_v0 = vld [vmem:[%s1864_s4] sm:$0xff]  ;;  %v311_v1 = vld [vmem:[%s1864_s4 + $0x8] sm:$0xff]  ;;  %p285_p0 = scmp.lt.s32.totalorder %s1712_s22, 1  ;;  %s313_s9 = sld [smem:[#allocation2]]  ;;  %vm333_vm0 = vcmask 130048   ;;  %v1667_v31 = vmov 0.0|0.0  }
  0x1e   : > { %v1561_v2 = vpack.c.bf16 %v311_v1, %v310_v0  ;;  %s1741_s10 = sld [smem:[#allocation2 + $0x2]]  ;;  %s1433_s11 = sld [smem:[#allocation2 + $0x1]]  ;;  %1565 = vmatprep.subr.bf16.mxu1 %v1667_v31  ;;  %vm1668_vm1 = vmmov 0   ;;  %v1669_v32 = vmov 0.0   ;;  %v312_v55 = vld [vmem:[%s1865_s5] sm:$0xff]  ;;  %vm1136_vm2 = vcmask 1040384  }
  0x1f   : > { %s1869_s22 = smov (!%p285_p0, %s1712_s22), 1  ;;  %s1746_s12 = sld [smem:[#allocation2 + $0x3]]  ;;  %1502 = vmatprep.mubr.msk.f32.mxu1 %vm1668_vm1, %v1669_v32  ;;  %vm1185_vm3 = vcmask 1046528   ;;  %vm1192_vm4 = vcmask 129024   ;;  %vm1218_vm5 = vcmask 121856  }
  0x20   : > { %1562 = vmatprep.subr.bf16.mxu0 %v1561_v2  ;;  %s1453_s13 = sshll.u32 %s1869_s22, 4  ;;  %s1666_s25 = smov 1  }
  0x21   : > { %1564 = vmatpush3.bf16.msra.mxu0 %v1561_v2  ;;  %s289_s16 = scalar_lea.vmem %s1861_s1, %s1453_s13  ;;  %s299_s19 = scalar_lea.vmem %s1863_s3, %s1453_s13 }
  0x22   : > { %1569 = vmatprep.subr.bf16.mxu0 %v1561_v2  ;;  %v1755_v3 = vld [vmem:[%s289_s16] sm:$0xff]  ;;  %v1757_v4 = vld [vmem:[%s289_s16 + $0x8] sm:$0xff]  ;;  %s294_s24 = scalar_lea.vmem %s1862_s2, %s1453_s13  ;;  %s1670_s26 = smov 127  }
  0x23   : > { %v1759_v5 = vld [vmem:[%s299_s19] sm:$0xff]  ;;  %v317_v6 = vstv %s313_s9  ;;  %v1764_v7 = vld [vmem:[%s299_s19 + $0x8] sm:$0xff]  ;;  %1157 = vrot.lane.b32.xlu0 %v1755_v3, %s1666_s25  ;;  %s1432_s29 = sshll.u32 %s1869_s22, 3 }
  0x24   : > { %v318_v8 = vsub.f32 %v1755_v3, %v317_v6  ;;  %v319_v9 = vsub.f32 %v1757_v4, %v317_v6  ;;  %v1768_v10 = vld [vmem:[%s294_s24] sm:$0xff]  ;;  %v1770_v11 = vld [vmem:[%s294_s24 + $0x8] sm:$0xff]  ;;  %v322_v12 = vstv %s1741_s10  ;;  %v325_v13 = vstv %s1433_s11  ;;  %s303_s8 = scalar_lea.vmem %s1866_s6, %s1432_s29 }
  0x25   : > { %1167 = vrot.lane.b32.xlu1 %v1768_v10, %s1666_s25  ;;  %v326_v16 = vsub.f32 %v1768_v10, %v325_v13  ;;  %v327_v17 = vsub.f32 %v1770_v11, %v325_v13  ;;  %v330_v18 = vstv %s1746_s12  ;;  %v1137_v6 = vrot.slane %v1755_v3, 7 }
  0x26   : > { %v320_v14 = vmul.f32 %v318_v8, %v1759_v5  ;;  %v321_v15 = vmul.f32 %v319_v9, %v1764_v7  ;;  %v1138_v8 = vrot.slane %v1757_v4, 7  ;;  %v1148_v9 = vrot.slane %v1768_v10, 7 }
  0x27   : > { %v328_v21 = vmul.f32 %v326_v16, %v1759_v5  ;;  %v329_v22 = vmul.f32 %v327_v17, %v1764_v7  ;;  %1159 = vrot.lane.b32.xlu0 %v1757_v4, %s1666_s25  ;;  %v1233_v13 = vrot.slane %v1759_v5, 1 }
  0x28   : > { %v323_v19 = vmul.f32 %v322_v12, %v320_v14  ;;  %v324_v20 = vmul.f32 %v322_v12, %v321_v15  ;;  %v1149_v12 = vrot.slane %v1770_v11, 7  ;;  %v1234_v14 = vrot.slane %v1764_v7, 1 }
  0x29   : > { %1169 = vrot.lane.b32.xlu1 %v1770_v11, %s1666_s25  ;;  %v331_v23 = vmul.f32 %v330_v18, %v328_v21  ;;  %v332_v24 = vmul.f32 %v330_v18, %v329_v22  ;;  %v1139_v15 = vsel %vm1136_vm2, %v1137_v6, %v1138_v8  ;;  %v1142_v18 = vsub.f32 %v1755_v3, %v1137_v6 }
  0x2a   : > { %1495 = vmatprep.mubr.msk.f32.mxu0 %vm333_vm0, %v323_v19  ;;  %v639_v25 = vmul.f32 %v323_v19, %v323_v19  ;;  %v640_v26 = vmul.f32 %v324_v20, %v324_v20  ;;  %v1150_v16 = vsel %vm1136_vm2, %v1148_v9, %v1149_v12  ;;  %v1235_v17 = vsel %vm1185_vm3, %v1233_v13, %v1234_v14 }
  0x2b   : > { %1496 = vmatmul.mubr.msk.f32.vlgmr.msra.gmra.mrb[0].mxu0 %vm333_vm0, %v324_v20  ;;  %v794_v27 = vmul.f32 %v331_v23, %v331_v23  ;;  %v795_v28 = vmul.f32 %v332_v24, %v332_v24  ;;  %v949_v29 = vmul.f32 %v331_v23, %v323_v19  ;;  %v950_v30 = vmul.f32 %v332_v24, %v324_v20 }
  0x2c   : > { %1571 = vmatpush3.bf16.msra.mxu0 %v1561_v2  ;;  %1509 = vmatprep.mubr.msk.f32.mxu0 %vm333_vm0, %v331_v23  ;;  %v1143_v19 = vsub.f32 %v1757_v4, %v1139_v15  ;;  %v1238_v20 = vsel %vm333_vm0, %v1235_v17, 0.0  ;;  %v1239_v21 = vsel %vm1192_vm4, %v1234_v14, 0.0  ;;  %v1153_v22 = vsub.f32 %v1768_v10, %v1148_v9 }
  0x2d   : > { %1576 = vmatprep.subr.bf16.mxu0 %v1561_v2  ;;  %v1154_v23 = vsub.f32 %v1770_v11, %v1150_v16 }
  0x2f   : > { %1510 = vmatmul.mubr.msk.f32.vlgmr.msra.gmra.mrb[2].mxu0 %vm333_vm0, %v332_v24  ;;  %v1240_v24 = vadd.f32 %v1239_v21, %v1238_v20 }
  0x30   : > { %1578 = vmatpush3.bf16.msra.mxu0 %v1561_v2  ;;  %1523 = vmatprep.mubr.msk.f32.mxu0 %vm333_vm0, %v639_v25  ;;  %v1144_v25 = vand.u32 2147483647, %v1142_v18 }
  0x31   : > { %1583 = vmatprep.subr.bf16.mxu0 %v1561_v2 }
  0x33   : > { %1524 = vmatmul.mubr.msk.f32.vlgmr.msra.gmra.mrb[4].mxu0 %vm333_vm0, %v640_v26  ;;  %v1145_v26 = vand.u32 2147483647, %v1143_v19 }
  0x34   : > { %1585 = vmatpush3.bf16.msra.mxu0 %v1561_v2  ;;  %1537 = vmatprep.mubr.msk.f32.mxu0 %vm333_vm0, %v794_v27  ;;  %v1155_v27 = vand.u32 2147483647, %v1153_v22 }
  0x35   : > { %1590 = vmatprep.subr.bf16.mxu0 %v1561_v2 }
  0x37   : > { %1538 = vmatmul.mubr.msk.f32.vlgmr.msra.gmra.mrb[6].mxu0 %vm333_vm0, %v795_v28  ;;  %v1156_v28 = vand.u32 2147483647, %v1154_v23 }
  0x38   : > { %1592 = vmatpush3.bf16.msra.mxu0 %v1561_v2  ;;  %1551 = vmatprep.mubr.msk.f32.mxu0 %vm333_vm0, %v949_v29  ;;  %v1270_v29 = vsel %vm333_vm0, %v1759_v5, 0.0 }
  0x3b   : > { %1552 = vmatmul.mubr.msk.f32.vlgmr.msra.gmra.mrb[8].mxu0 %vm333_vm0, %v950_v30  ;;  %v1271_v30 = vsel %vm333_vm0, %v1764_v7, 0.0 }
  0x95   : > { %v1158_v34 = vpop.permute.xlu0 %1157 }
  0x96   : > { %v1163_v36 = vsub.f32 %v1755_v3, %v1158_v34 }
  0x97   : > { %v1168_v33 = vpop.permute.xlu1 %1167 }
  0x98   : > { %v1173_v35 = vsub.f32 %v1768_v10, %v1168_v33  ;;  %v1165_v38 = vand.u32 2147483647, %v1163_v36  ;;  %v1272_v33 = vadd.f32 %v1271_v30, %v1270_v29  ;;  %v1117_v30 = vlaneseq }
  0x99   : > { %v1160_v40 = vpop.permute.xlu0 %1159 }
  0x9a   : > { %v1175_v37 = vand.u32 2147483647, %v1173_v35  ;;  %v1164_v43 = vsub.f32 %v1757_v4, %v1160_v40 }
  0x9b   : > { %v1170_v39 = vpop.permute.xlu1 %1169 }
  0x9c   : > { %v1204_v41 = vsub.f32 %v1165_v38, %v1175_v37  ;;  %v1174_v42 = vsub.f32 %v1770_v11, %v1170_v39  ;;  %v1166_v46 = vand.u32 2147483647, %v1164_v43 }
  0x9e   : > { %v1206_v44 = vand.u32 2147483647, %v1204_v41  ;;  %v1176_v45 = vand.u32 2147483647, %v1174_v42 }
  0xa0   : > { %v1205_v47 = vsub.f32 %v1166_v46, %v1176_v45  ;;  %v1208_v48 = vmul.f32 %v1206_v44, %v1759_v5 }
  0xa2   : > { %v1207_v49 = vand.u32 2147483647, %v1205_v47  ;;  %1212 = vrot.lane.b32.xlu0 %v1208_v48, %s1670_s26 }
  0xa4   : > { %v1209_v50 = vmul.f32 %v1207_v49, %v1764_v7 }
  0xa6   : > { %1214 = vrot.lane.b32.xlu1 %v1209_v50, %s1670_s26  ;;  %1250 = vrot.lane.b32.xlu0 %v1759_v5, %s1670_s26  ;;  %v1268_v50 = vsub.f32 %v1755_v3, %v1768_v10 }
  0xaa   : > { %1252 = vrot.lane.b32.xlu1 %v1764_v7, %s1670_s26 }
  0xc5   : > { %1241 = vadd.xlane.f32.xlu0 %v1240_v24 }
  0xc9   : > { %1273 = vadd.xlane.f32.xlu0 %v1272_v33 }
  0xfe   : > { %v1497_v51 = vpop.f32.mrb[0].mxu0 }
  0xff   : > { %v406_v52 = vpop.f32.mrb[1].mxu0 }
 0x100   : > { %v1566_v53 = vpack.c.bf16 %v1497_v51, %v406_v52  ;;  %v1269_v51 = vsub.f32 %v1757_v4, %v1770_v11  ;;  %v1298_v4 = vmul.f32 %v1268_v50, %v1268_v50 }
 0x102   : > { %1567 = vmatpush3.bf16.msra.mxu1 %v1566_v53  ;;  %v1511_v54 = vpop.f32.mrb[2].mxu0  ;;  %v1299_v11 = vmul.f32 %v1269_v51, %v1269_v51 }
 0x103   : > { %v560_v56 = vpop.f32.mrb[3].mxu0  ;;  %1572 = vmatprep.subr.bf16.mxu1 %v1667_v31 }
 0x104   : > { %v1573_v57 = vpack.c.bf16 %v1511_v54, %v560_v56  ;;  %v1283_v56 = vand.u32 2147483647, %v1269_v51 }
 0x105   : > { %1503 = vmatmul.mubr.msk.f32.vlgmr.msra.gmra.mrb[0].mxu1 %vm333_vm0, %v312_v55 }
 0x106   : > { %1574 = vmatpush3.bf16.msra.mxu1 %v1573_v57  ;;  %v1525_v58 = vpop.f32.mrb[4].mxu0  ;;  %1516 = vmatprep.mubr.msk.f32.mxu1 %vm1668_vm1, %v1669_v32 }
 0x107   : > { %v713_v59 = vpop.f32.mrb[5].mxu0  ;;  %1579 = vmatprep.subr.bf16.mxu1 %v1667_v31 }
 0x108   : > { %v1580_v60 = vpack.c.bf16 %v1525_v58, %v713_v59  ;;  %v1285_v59 = vmul.f32 %v1283_v56, %v1764_v7 }
 0x109   : > { %1517 = vmatmul.mubr.msk.f32.vlgmr.msra.gmra.mrb[2].mxu1 %vm333_vm0, %v312_v55 }
 0x10a   : > { %1581 = vmatpush3.bf16.msra.mxu1 %v1580_v60  ;;  %v1539_v61 = vpop.f32.mrb[6].mxu0  ;;  %1530 = vmatprep.mubr.msk.f32.mxu1 %vm1668_vm1, %v1669_v32  ;;  %v1287_v3 = vsel %vm333_vm0, %v1285_v59, 0.0 }
 0x10b   : > { %v868_v62 = vpop.f32.mrb[7].mxu0  ;;  %1586 = vmatprep.subr.bf16.mxu1 %v1667_v31 }
 0x10c   : > { %v1587_v63 = vpack.c.bf16 %v1539_v61, %v868_v62  ;;  %v1300_v61 = vmul.f32 %v1298_v4, %v1759_v5  ;;  %v1301_v62 = vmul.f32 %v1299_v11, %v1764_v7 }
 0x10d   : > { %1531 = vmatmul.mubr.msk.f32.vlgmr.msra.gmra.mrb[4].mxu1 %vm333_vm0, %v312_v55 }
 0x10e   : > { %1588 = vmatpush3.bf16.msra.mxu1 %v1587_v63  ;;  %v1553_v0 = vpop.f32.mrb[8].mxu0  ;;  %1544 = vmatprep.mubr.msk.f32.mxu1 %vm1668_vm1, %v1669_v32  ;;  %v1302_v63 = vsel %vm333_vm0, %v1300_v61, 0.0 }
 0x10f   : > { %v1023_v1 = vpop.f32.mrb[9].mxu0  ;;  %1593 = vmatprep.subr.bf16.mxu1 %v1667_v31  ;;  %v1177_v31 = vsub.f32 %v1144_v25, %v1155_v27 }
 0x110   : > { %v1594_v2 = vpack.c.bf16 %v1553_v0, %v1023_v1  ;;  %v1303_v0 = vsel %vm333_vm0, %v1301_v62, 0.0 }
 0x111   : > { %1545 = vmatmul.mubr.msk.f32.vlgmr.msra.gmra.mrb[6].mxu1 %vm333_vm0, %v312_v55  ;;  %v1179_v34 = vand.u32 2147483647, %v1177_v31  ;;  %v1304_v1 = vadd.f32 %v1303_v0, %v1302_v63 }
 0x112   : > { %1595 = vmatpush3.bf16.msra.mxu1 %v1594_v2  ;;  %1558 = vmatprep.mubr.msk.f32.mxu1 %vm1668_vm1, %v1669_v32  ;;  %v1178_v32 = vsub.f32 %v1145_v26, %v1156_v28 }
 0x113   : > { %v1181_v40 = vmul.f32 %v1179_v34, %v1759_v5  ;;  %v1118_v34 = vshrl.u32 %v1117_v30, 7 }
 0x114   : > { %v1180_v35 = vand.u32 2147483647, %v1178_v32  ;;  %v1213_v37 = vpop.permute.xlu0 %1212 }
 0x115   : > { %1559 = vmatmul.mubr.msk.f32.vlgmr.msra.gmra.mrb[8].mxu1 %vm333_vm0, %v312_v55  ;;  %v1219_v39 = vsel %vm1218_vm5, %v1213_v37, 0.0  ;;  %v1186_v43 = vrot.slane %v1181_v40, 1  ;;  %v1282_v55 = vand.u32 2147483647, %v1268_v50  ;;  %vm1121_vm6 = vcmp.lt.s32.totalorder %v1118_v34, 6 }
 0x116   : > { %v1182_v41 = vmul.f32 %v1180_v35, %v1764_v7  ;;  %v1120_v35 = vand.u32 127, %v1117_v30 }
 0x117   : > { %v1284_v58 = vmul.f32 %v1282_v55, %v1759_v5 }
 0x118   : > { %v1215_v36 = vpop.permute.xlu1 %1214  ;;  %v1187_v44 = vrot.slane %v1182_v41, 1  ;;  %v1251_v48 = vpop.permute.xlu0 %1250  ;;  %vm1122_vm7 = vcmp.lt.s32.totalorder %v1120_v35, 6 }
 0x119   : > { %v1220_v38 = vsel %vm1218_vm5, %v1215_v36, 0.0  ;;  %v1256_v53 = vsel %vm1218_vm5, %v1251_v48, 0.0  ;;  %v1286_v60 = vsel %vm333_vm0, %v1284_v58, 0.0  ;;  %vm1123_vm8 = vmand %vm1121_vm6, %vm1122_vm7 }
 0x11a   : > { %v1221_v42 = vadd.f32 %v1220_v38, %v1219_v39  ;;  %v1188_v45 = vsel %vm1185_vm3, %v1186_v43, %v1187_v44  ;;  %v1193_v46 = vsel %vm1192_vm4, %v1187_v44, 0.0  ;;  %v1288_v10 = vadd.f32 %v1287_v3, %v1286_v60 }
 0x11b   : > { %v1191_v49 = vsel %vm333_vm0, %v1188_v45, 0.0 }
 0x11c   : > { %1222 = vadd.xlane.f32.xlu0 %v1221_v42  ;;  %v1253_v47 = vpop.permute.xlu1 %1252  ;;  %v1194_v54 = vadd.f32 %v1193_v46, %v1191_v49 }
 0x11d   : > { %v1257_v52 = vsel %vm1218_vm5, %v1253_v47, 0.0 }
 0x11e   : > { %1195 = vadd.xlane.f32.xlu1 %v1194_v54  ;;  %v1258_v57 = vadd.f32 %v1257_v52, %v1256_v53 }
 0x122   : > { %1259 = vadd.xlane.f32.xlu1 %v1258_v57 }
 0x126   : > { %1289 = vadd.xlane.f32.xlu1 %v1288_v10 }
 0x152   : > { %v1242_v39 = vpop.xlane.xlu0 %1241 }
 0x153   : > { %v1243_v46 = vrot.slane %v1242_v39, 4 }
 0x155   : > { %v1244_v53 = vadd.f32 %v1243_v46, %v1242_v39 }
 0x156   : > { %v1274_v41 = vpop.xlane.xlu0 %1273 }
 0x157   : > { %v1275_v49 = vrot.slane %v1274_v41, 4  ;;  %v1245_v3 = vrot.slane %v1244_v53, 2 }
 0x159   : > { %v1276_v55 = vadd.f32 %v1275_v49, %v1274_v41 }
 0x15b   : > { %v1277_v11 = vrot.slane %v1276_v55, 2 }
 0x1a9   : > { %v1223_v43 = vpop.xlane.xlu0 %1222 }
 0x1aa   : > { %v1224_v45 = vrot.slane %v1223_v43, 4 }
 0x1ab   : > { %v1196_v40 = vpop.xlane.xlu1 %1195 }
 0x1ac   : > { %v1197_v44 = vrot.slane %v1196_v40, 4  ;;  %v1225_v51 = vadd.f32 %v1224_v45, %v1223_v43 }
 0x1ae   : > { %v1198_v50 = vadd.f32 %v1197_v44, %v1196_v40  ;;  %v1226_v58 = vrot.slane %v1225_v51, 2 }
 0x1af   : > { %v1260_v42 = vpop.xlane.xlu1 %1259 }
 0x1b0   : > { %v1261_v48 = vrot.slane %v1260_v42, 4  ;;  %v1199_v56 = vrot.slane %v1198_v50, 2 }
 0x1b2   : > { %v1262_v54 = vadd.f32 %v1261_v48, %v1260_v42  ;;  %v1200_v62 = vadd.f32 %v1199_v56, %v1198_v50 }
 0x1b3   : > { %v1290_v47 = vpop.xlane.xlu1 %1289 }
 0x1b4   : > { %v1291_v52 = vrot.slane %v1290_v47, 4  ;;  %v1263_v10 = vrot.slane %v1262_v54, 2 }
 0x1b6   : > { %v1292_v59 = vadd.f32 %v1291_v52, %v1290_v47 }
 0x1b8   : > { %v1293_v63 = vrot.slane %v1292_v59, 2 }
 0x1d8   : > { %v484_v2 = vpop.f32.mrb[0].mxu1 }
 0x1d9   : > { %v1504_v6 = vpop.f32.mrb[1].mxu1  ;;  %v1104_v8 = vmul.f32 2.0, %v484_v2  ;;  %v792_v14 = vmul.f32 %v484_v2, %v484_v2 }
 0x1da   : > { %v1246_v6 = vadd.f32 %v1245_v3, %v1244_v53 }
 0x1dc   : > { %v635_v9 = vpop.f32.mrb[2].mxu1 }
 0x1dd   : > { %v1105_v12 = vmul.f32 %v1104_v8, %v635_v9  ;;  %v1518_v13 = vpop.f32.mrb[3].mxu1  ;;  %v947_v15 = vmul.f32 %v635_v9, %v635_v9  ;;  %v1102_v16 = vmul.f32 %v635_v9, %v484_v2  ;;  %v1227_v2 = vadd.f32 %v1226_v58, %v1225_v51 }
 0x1de   : > { %v1201_v13 = vrot.slane %v1200_v62, 1 }
 0x1df   : > { %v1110_v17 = vadd.f32 %v947_v15, %v792_v14  ;;  %v1106_v31 = vadd.f32 0.0001, %v1105_v12  ;;  %v1264_v12 = vadd.f32 %v1263_v10, %v1262_v54 }
 0x1e0   : > { %v788_v18 = vpop.f32.mrb[4].mxu1 }
 0x1e1   : > { %v793_v19 = vsub.f32 %v788_v18, %v792_v14  ;;  %v1532_v5 = vpop.f32.mrb[5].mxu1  ;;  %v1111_v24 = vadd.f32 0.0001, %v1110_v17  ;;  %v1278_v14 = vadd.f32 %v1277_v11, %v1276_v55  ;;  %v1228_v18 = vrot.slane %v1227_v2, 1 }
 0x1e4   : > { %v943_v20 = vpop.f32.mrb[6].mxu1 }
 0x1e5   : > { %v948_v7 = vsub.f32 %v943_v20, %v947_v15  ;;  %v1546_v21 = vpop.f32.mrb[7].mxu1  ;;  %v1294_v15 = vadd.f32 %v1293_v63, %v1292_v59 }
 0x1e6   : > { %v1202_v21 = vadd.f32 %v1201_v13, %v1200_v62 }
 0x1e7   : > { %v1112_v22 = vadd.f32 %v948_v7, %v793_v19  ;;  %v1247_v19 = vrot.slane %v1246_v6, 1  ;;  %v1265_v7 = vrot.slane %v1264_v12, 1 }
 0x1e8   : > { %v1098_v23 = vpop.f32.mrb[8].mxu1 }
 0x1e9   : > { %v1113_v25 = vadd.f32 0.0009, %v1112_v22  ;;  %v1103_v26 = vsub.f32 %v1098_v23, %v1102_v16  ;;  %v1560_v27 = vpop.f32.mrb[9].mxu1  ;;  %v1279_v22 = vrot.slane %v1278_v14, 1  ;;  %v1229_v23 = vadd.f32 %v1228_v18, %v1227_v2 }
 0x1ea   : > { %v1266_v27 = vadd.f32 %v1265_v7, %v1264_v12 }
 0x1eb   : > { %v1114_v28 = vmul.f32 %v1113_v25, %v1111_v24  ;;  %v1107_v29 = vmul.f32 2.0, %v1103_v26  ;;  %v1295_v24 = vrot.slane %v1294_v15, 1  ;;  %v1248_v26 = vadd.f32 %v1247_v19, %v1246_v6 }
 0x1ed   : > { %1636 = vrcp.f32 %v1114_v28  ;;  %v1108_v32 = vadd.f32 0.0009, %v1107_v29  ;;  %v1280_v28 = vadd.f32 %v1279_v22, %v1278_v14  ;;  %v1296_v30 = vadd.f32 %v1295_v24, %v1294_v15 }
 0x1ef   : > { %v1109_v33 = vmul.f32 %v1108_v32, %v1106_v31 }
 0x1f7   : > { %v1637_v36 = vpop.eup %1636 }
 0x1f8   : > { %v1116_v37 = vmul.f32 %v1637_v36, %v1109_v33 }
 0x1fa   : > { %v1124_v38 = vsel %vm1123_vm8, %v1116_v37, 0.0 }
 0x1fb   : > { %1125 = vadd.xlane.f32.xlu0 %v1124_v38 }
 0x1ff   : > { %1305 = vadd.xlane.f32.xlu0 %v1304_v1 }
 0x288   : > { %v1126_v57 = vpop.xlane.xlu0 %1125 }
 0x289   : > { %v1127_v60 = vrot.slane %v1126_v57, 4 }
 0x28b   : > { %v1128_v4 = vadd.f32 %v1127_v60, %v1126_v57 }
 0x28c   : > { %v1306_v61 = vpop.xlane.xlu0 %1305 }
 0x28d   : > { %v1129_v0 = vrot.slane %v1128_v4, 2  ;;  %v1307_v1 = vrot.slane %v1306_v61, 4 }
 0x28f   : > { %v1308_v8 = vadd.f32 %v1307_v1, %v1306_v61  ;;  %v1130_v9 = vadd.f32 %v1129_v0, %v1128_v4 }
 0x291   : > { %v1309_v16 = vrot.slane %v1308_v8, 2  ;;  %v1131_v17 = vrot.slane %v1130_v9, 1 }
 0x293   : > { %v1310_v5 = vadd.f32 %v1309_v16, %v1308_v8  ;;  %v1132_v20 = vadd.f32 %v1131_v17, %v1130_v9 }
 0x295   : > { %1596 = vpush %v1132_v20  ;;  %v1311_v25 = vrot.slane %v1310_v5, 1 }
 0x296   : > { %1598 = vpush %v1202_v21 }
 0x297   : > { %1600 = vpush %v1229_v23  ;;  %v1312_v29 = vadd.f32 %v1311_v25, %v1310_v5 }
 0x298   : > { %1602 = vpush %v1248_v26 }
 0x299   : > { %1604 = vpush %v1266_v27 }
 0x29a   : > { %1606 = vpush %v1280_v28 }
 0x29b   : > { %1608 = vpush %v1296_v30 }
 0x29c   : > { %1610 = vpush %v1312_v29 }
 0x2c6   : > { %s1597_s9 = spop %1596 }
 0x2c7   : > { %v1314_v31 = vstv %s1597_s9  ;;  %s1599_s10 = spop %1598 }
 0x2c8   : > { %1315 = vst [vmem:[%s303_s8] sm:$0x1] %v1314_v31  ;;  %v1316_v32 = vstv %s1599_s10  ;;  %s1601_s11 = spop %1600 }
 0x2c9   : > { %1317 = vst [vmem:[%s303_s8 + $0x1] sm:$0x1] %v1316_v32  ;;  %v1318_v33 = vstv %s1601_s11  ;;  %s1603_s12 = spop %1602 }
 0x2ca   : > { %1319 = vst [vmem:[%s303_s8 + $0x2] sm:$0x1] %v1318_v33  ;;  %v1320_v34 = vstv %s1603_s12  ;;  %s1605_s13 = spop %1604 }
 0x2cb   : > { %1321 = vst [vmem:[%s303_s8 + $0x3] sm:$0x1] %v1320_v34  ;;  %v1322_v35 = vstv %s1605_s13  ;;  %s1607_s14 = spop %1606 }
 0x2cc   : > { %1323 = vst [vmem:[%s303_s8 + $0x4] sm:$0x1] %v1322_v35  ;;  %v1324_v36 = vstv %s1607_s14  ;;  %s1609_s22 = spop %1608 }
 0x2cd   : > { %1325 = vst [vmem:[%s303_s8 + $0x5] sm:$0x1] %v1324_v36  ;;  %v1326_v37 = vstv %s1609_s22  ;;  %s1611_s15 = spop %1610 }
 0x2ce   : > { %1327 = vst [vmem:[%s303_s8 + $0x6] sm:$0x1] %v1326_v37  ;;  %v1328_v38 = vstv %s1611_s15 }
 0x2cf   : > { %1329 = vst [vmem:[%s303_s8 + $0x7] sm:$0x1] %v1328_v38 }
 0x2d0 PF: > { %s17_s21 = sadd.s32 1, %s1663_s21  }
 0x2d1   : > { %p14_p1 = scmp.ge.s32.totalorder %s17_s21, 4  }
 0x2d3   :  { %16 = sbr.rel (!%p14_p1) target bundleno = 1 (0x1), region = 85 }
 0x2da   :  { %1349 = vsyncpa [#allocation3], 1 }
 0x2db   :  { %1351 = vsyncpa [#allocation3 + $0x1], 1 }

</bundles_post_ra>
